<compile_context>
chip_gen: v7x
topology: tpu7x:2x2x1
jax: 0.10.0
libtpu: 0.0.40
codegen_flags: <defaults>
</compile_context>

<pallas_src>
import math
import functools

import jax
import jax.numpy as jnp
from jax.experimental import pallas as pl
from jax.experimental.pallas import tpu as pltpu


def _round_up(a, b):
    return ((a + b - 1) // b) * b


def _make_gcn_kernel(tile_k, xw_resident, acc_in_out):
    """Build the kernel body.

    tile_k      : K-chunk size of the adjacency tile.
    xw_resident : xw ref holds the full (n_k, C_pad) array (sliced by k in-kernel).
    acc_in_out  : accumulate directly into the (f32) output block; otherwise use
                  an f32 VMEM scratch and cast on the last K step.
    """

    def _xw_chunk(xw_ref, k):
        if xw_resident:
            off = pl.multiple_of(k * tile_k, tile_k)
            return xw_ref[pl.ds(off, tile_k), :]
        return xw_ref[...]

    if acc_in_out:
        def kernel(a_ref, xw_ref, b_ref, o_ref):
            k = pl.program_id(1)

            @pl.when(k == 0)
            def _():
                o_ref[...] = jnp.broadcast_to(b_ref[...], o_ref.shape)

            o_ref[...] += jnp.dot(a_ref[...], _xw_chunk(xw_ref, k),
                                  preferred_element_type=jnp.float32)
        return kernel

    def kernel(a_ref, xw_ref, b_ref, o_ref, acc_ref):
        k = pl.program_id(1)

        @pl.when(k == 0)
        def _():
            acc_ref[...] = jnp.zeros_like(acc_ref)

        acc_ref[...] += jnp.dot(a_ref[...], _xw_chunk(xw_ref, k),
                                preferred_element_type=jnp.float32)

        @pl.when(k == pl.num_programs(1) - 1)
        def _():
            o_ref[...] = (acc_ref[...] + b_ref[...]).astype(o_ref.dtype)

    return kernel


def gcn_conv(graph, x, weight, bias, *, tile_m=512, tile_k=2048,
             use_bf16=True, adjacency_buffer_count=2,
             xw_resident_max_bytes=8 * 1024 * 1024,
             vmem_limit_bytes=None):
    """GCNConv forward (edge_attr=None):  (graph @ x) @ W^T + b.

    graph : [N, N]  dense normalized adjacency (f32 or already bf16)
    x     : [N, C_in] node features
    weight: [C_out, C_in]  (nn.Linear weight)
    bias  : [C_out] or None
    """
    N, C_in = x.shape
    C_out = weight.shape[0]
    assert graph.shape == (N, N)
    out_dtype = x.dtype
    compute_dtype = jnp.bfloat16 if use_bf16 else jnp.float32

    # ---- one-shot prologue: xw = x @ W^T (tiny, f32) ----
    xw = jnp.dot(x.astype(jnp.float32), weight.astype(jnp.float32).T,
                 preferred_element_type=jnp.float32)

    # ---- tile selection -------------------------------------------------
    # Rows: multiple of 16 (bf16 sublane packing), never larger than padded N.
    tile_m = max(16, min(tile_m, _round_up(N, 16)))
    tile_m = _round_up(tile_m, 16)
    # Megacore (v7x): keep >=2 row blocks for mid-size graphs.
    if N > 512 and _round_up(N, tile_m) // tile_m < 2:
        tile_m = _round_up((N + 1) // 2, 16)
    # Contraction: multiple of 128 lanes.
    tile_k = max(128, min(tile_k, _round_up(N, 128)))
    tile_k = _round_up(tile_k, 128)

    n_m = _round_up(N, tile_m)       # padded row count
    n_k = _round_up(N, tile_k)       # padded contraction count
    c_pad = _round_up(C_out, 128)    # lane-dense output width

    # ---- adjacency: cast / pad only when actually needed ----------------
    g = graph if graph.dtype == compute_dtype else graph.astype(compute_dtype)
    if (n_m, n_k) != (N, N):
        g = jnp.pad(g, ((0, n_m - N), (0, n_k - N)))

    # xw / bias padded to (n_k, c_pad): tiny, always materialized.
    xw_p = jnp.pad(xw.astype(compute_dtype), ((0, n_k - N), (0, c_pad - C_out)))
    if bias is None:
        b2 = jnp.zeros((1, c_pad), dtype=jnp.float32)
    else:
        b2 = jnp.pad(bias.reshape(1, C_out).astype(jnp.float32),
                     ((0, 0), (0, c_pad - C_out)))

    # ---- xw residency + accumulation strategy ----------------------------
    cb = jnp.dtype(compute_dtype).itemsize
    xw_resident = (n_k * c_pad * cb) <= xw_resident_max_bytes
    acc_in_out = (out_dtype == jnp.float32)   # accumulate straight into o_ref
    pallas_out_dtype = jnp.float32 if acc_in_out else out_dtype

    grid = (n_m // tile_m, n_k // tile_k)

    # ---- BlockSpecs -------------------------------------------------------
    adj_spec_kwargs = {}
    if adjacency_buffer_count != 2:
        adj_spec_kwargs["pipeline_mode"] = pl.Buffered(adjacency_buffer_count)
    adj_spec = pl.BlockSpec((tile_m, tile_k), lambda i, k: (i, k),
                            **adj_spec_kwargs)

    if xw_resident:
        xw_spec = pl.BlockSpec((n_k, c_pad), lambda i, k: (0, 0))   # fetched once
    else:
        xw_spec = pl.BlockSpec((tile_k, c_pad), lambda i, k: (k, 0))

    bias_spec = pl.BlockSpec((1, c_pad), lambda i, k: (0, 0))
    out_spec = pl.BlockSpec((tile_m, c_pad), lambda i, k: (i, 0))

    scratch_shapes = [] if acc_in_out else [pltpu.VMEM((tile_m, c_pad), jnp.float32)]

    # ---- VMEM budget ------------------------------------------------------
    if vmem_limit_bytes is None:
        ob = jnp.dtype(pallas_out_dtype).itemsize
        nbuf = max(2, adjacency_buffer_count)
        est = nbuf * tile_m * tile_k * cb                      # adjacency buffers
        est += (2 * n_k * c_pad * cb) if xw_resident else (2 * tile_k * c_pad * cb)
        est += 2 * tile_m * c_pad * ob                         # output buffers
        if not acc_in_out:
            est += tile_m * c_pad * 4                          # f32 accumulator
        est += 2 * c_pad * 4                                   # bias
        vmem_limit_bytes = max(int(est * 1.25), 16 * 1024 * 1024)

    kernel = _make_gcn_kernel(tile_k, xw_resident, acc_in_out)

    out_padded = pl.pallas_call(
        kernel,
        out_shape=jax.ShapeDtypeStruct((n_m, c_pad), pallas_out_dtype),
        grid_spec=pltpu.PrefetchScalarGridSpec(
            num_scalar_prefetch=0,
            grid=grid,
            in_specs=[adj_spec, xw_spec, bias_spec],
            out_specs=out_spec,
            scratch_shapes=scratch_shapes,
        ),
        compiler_params=pltpu.CompilerParams(
            dimension_semantics=("parallel", "arbitrary"),
            vmem_limit_bytes=vmem_limit_bytes,
        ),
    )(g, xw_p, b2)

    out = out_padded[:N, :C_out]
    if out.dtype != out_dtype:
        out = out.astype(out_dtype)
    return out


def glorot_init(key, shape):
    # matches torch_geometric glorot: U(-a, a), a = sqrt(6 / (fan_in + fan_out))
    fan_out, fan_in = shape
    a = math.sqrt(6.0 / (fan_in + fan_out))
    return jax.random.uniform(key, shape, minval=-a, maxval=a, dtype=jnp.float32)


# TODO(synk): edge_attr path (norm-scaled scatter_add of edge features by row
# index + torch.cat) requires a sparse storage layout; only the edge_attr=None
# forward is reproduced here.

if __name__ == "__main__":
    key = jax.random.PRNGKey(0)
    k_x, k_g, k_w = jax.random.split(key, 3)

    N = 200        # number of nodes (deliberately NOT a tile multiple)
    C_IN = 32      # in_channels
    C_OUT = 32     # out_channels

    x = jax.random.normal(k_x, (N, C_IN), dtype=jnp.float32)

    # Deterministic dense "normalized adjacency": sparse-ish random matrix,
    # row-normalized (stand-in for D^-1/2 A D^-1/2).
    raw = jax.random.uniform(k_g, (N, N), dtype=jnp.float32)
    adj = jnp.where(raw > 0.9, raw, 0.0) + jnp.eye(N, dtype=jnp.float32)
    deg = jnp.sum(adj, axis=1, keepdims=True)
    graph = adj / deg

    weight = glorot_init(k_w, (C_OUT, C_IN))
    bias = jnp.zeros((C_OUT,), dtype=jnp.float32)

    # Pure-JAX reference (f32)
    y_ref = (graph @ x) @ weight.T + bias[None, :]

    # Default (large) tiles: single row tile / single K tile at this small N,
    # xw resident, accumulate directly into the f32 output block.
    y1 = jax.block_until_ready(gcn_conv(graph, x, weight, bias))

    # Small tiles: exercises row tiling, K-axis accumulation over the resident
    # xw (dynamic pl.ds slice) and tail padding.
    y2 = jax.block_until_ready(
        gcn_conv(graph, x, weight, bias, tile_m=128, tile_k=128))

    # bf16 node features: exercises the f32-scratch-accumulator kernel variant
    # (bf16 output path).
    y3 = jax.block_until_ready(
        gcn_conv(graph, x.astype(jnp.bfloat16), weight, bias,
                 tile_m=128, tile_k=128))

    assert y1.shape == (N, C_OUT) and y2.shape == (N, C_OUT)
    assert y3.shape == (N, C_OUT) and y3.dtype == jnp.bfloat16
    assert jnp.allclose(y1, y_ref, atol=2e-2, rtol=2e-2), "mismatch (default tiles)"
    assert jnp.allclose(y2, y_ref, atol=2e-2, rtol=2e-2), "mismatch (small tiles)"
    assert jnp.allclose(y3.astype(jnp.float32), y_ref, atol=5e-2, rtol=5e-2), \
        "mismatch (bf16 output path)"

    print("KERNEL_OK")
</pallas_src>

<mosaic_0001>
module attributes {stable_mosaic.version = 11 : i64} {
  func.func @kernel(%arg0: i32, %arg1: i32, %arg2: memref<208x256xbf16, #tpu.memory_space<vmem>>, %arg3: memref<256x128xbf16, #tpu.memory_space<vmem>>, %arg4: memref<1x128xf32, #tpu.memory_space<vmem>>, %arg5: memref<208x128xf32, #tpu.memory_space<vmem>>) attributes {dimension_semantics = [#tpu.dimension_semantics<parallel>, #tpu.dimension_semantics<arbitrary>], iteration_bounds = array<i64: 1, 1>, scalar_prefetch = 0 : i64, scratch_operands = 0 : i64, tpu.core_type = #tpu.core_type<tc>, window_params = [{transform_indices = @transform_0, window_bounds = array<i64: 208, 256>}, {pipeline_mode = #tpu.pipeline_mode<synchronous>, transform_indices = @transform_1, window_bounds = array<i64: 256, 128>}, {pipeline_mode = #tpu.pipeline_mode<synchronous>, transform_indices = @transform_2, window_bounds = array<i64: 1, 128>}, {transform_indices = @transform_3, window_bounds = array<i64: 208, 128>}]} {
    %c0_i32 = arith.constant 0 : i32
    %0 = arith.cmpi eq, %arg1, %c0_i32 : i32
    %1 = arith.extui %0 : i1 to i32
    %c0_i32_0 = arith.constant 0 : i32
    %2 = arith.cmpi ne, %1, %c0_i32_0 : i32
    scf.if %2 {
      %c0_7 = arith.constant 0 : index
      %c0_8 = arith.constant 0 : index
      %12 = vector.load %arg4[%c0_7, %c0_8] : memref<1x128xf32, #tpu.memory_space<vmem>>, vector<1x128xf32>
      %13 = vector.shape_cast %12 : vector<1x128xf32> to vector<1x128xf32>
      %14 = vector.broadcast %13 : vector<1x128xf32> to vector<208x128xf32>
      %c0_9 = arith.constant 0 : index
      %c0_10 = arith.constant 0 : index
      %15 = vector.load %arg5[%c0_9, %c0_10] : memref<208x128xf32, #tpu.memory_space<vmem>>, vector<208x128xf32>
      tpu.vector_store %arg5[%c0_9, %c0_10], %14 {strides = array<i32>} : memref<208x128xf32, #tpu.memory_space<vmem>>, vector<208x128xf32>,
    } else {
    }
    %c0 = arith.constant 0 : index
    %c0_1 = arith.constant 0 : index
    %3 = vector.load %arg5[%c0, %c0_1] : memref<208x128xf32, #tpu.memory_space<vmem>>, vector<208x128xf32>
    %c0_2 = arith.constant 0 : index
    %c0_3 = arith.constant 0 : index
    %4 = vector.load %arg2[%c0_2, %c0_3] : memref<208x256xbf16, #tpu.memory_space<vmem>>, vector<208x256xbf16>
    %c256_i32 = arith.constant 256 : i32
    %5 = arith.muli %arg1, %c256_i32 : i32
    %6 = tpu.assume_multiple %5, 256 : i32
    %7 = arith.index_cast %6 : i32 to index
    %c0_4 = arith.constant 0 : index
    %8 = vector.load %arg3[%7, %c0_4] : memref<256x128xbf16, #tpu.memory_space<vmem>>, vector<256x128xbf16>
    %cst = arith.constant dense<0.000000e+00> : vector<208x128xf32>
    %9 = tpu.matmul %4, %8, %cst {dimension_numbers = #tpu.dot_dimension_numbers<[1], [0], [0], [1], [0, 0, 1, 1], [], []>} : vector<208x256xbf16>, vector<256x128xbf16>, vector<208x128xf32> -> vector<208x128xf32>
    %10 = arith.addf %3, %9 : vector<208x128xf32>
    %c0_5 = arith.constant 0 : index
    %c0_6 = arith.constant 0 : index
    %11 = vector.load %arg5[%c0_5, %c0_6] : memref<208x128xf32, #tpu.memory_space<vmem>>, vector<208x128xf32>
    tpu.vector_store %arg5[%c0_5, %c0_6], %10 {strides = array<i32>} : memref<208x128xf32, #tpu.memory_space<vmem>>, vector<208x128xf32>,
    return
  }
  func.func @transform_0(%arg0: i32, %arg1: i32) -> (i32, i32) {
    %c0_i32 = arith.constant 0 : i32
    return %arg0, %arg1 : i32, i32
  }
  func.func @transform_1(%arg0: i32, %arg1: i32) -> (i32, i32) {
    %c0_i32 = arith.constant 0 : i32
    %c0_i32_0 = arith.constant 0 : i32
    %c0_i32_1 = arith.constant 0 : i32
    return %c0_i32, %c0_i32_0 : i32, i32
  }
  func.func @transform_2(%arg0: i32, %arg1: i32) -> (i32, i32) {
    %c0_i32 = arith.constant 0 : i32
    %c0_i32_0 = arith.constant 0 : i32
    %c0_i32_1 = arith.constant 0 : i32
    return %c0_i32, %c0_i32_0 : i32, i32
  }
  func.func @transform_3(%arg0: i32, %arg1: i32) -> (i32, i32) {
    %c0_i32 = arith.constant 0 : i32
    %c0_i32_0 = arith.constant 0 : i32
    return %arg0, %c0_i32 : i32, i32
  }
}

</mosaic_0001>

<bundles_post_ra>
// kernel: tpu_custom_call.1
= control target key start
LH: loop header
LB: loop body
LE: loop exit
PB: predicated region body
PF: predicated region fallthrough
CT: control target
= control target key end

     0   :  { %8 = vsyncpa [#allocation3], 0  ;;  %s992_s0 = inlined_call_operand.hbm [shape: bf16[208,256], index: 0, kind: input, shape index: {}]   ;;  %s993_s1 = inlined_call_operand.hbm [shape: bf16[256,128], index: 1, kind: input, shape index: {}]   ;;  %s994_s2 = inlined_call_operand.vmem [shape: f32[1,128], index: 2, kind: input, shape index: {}]   ;;  %s995_s3 = inlined_call_operand.hbm [shape: f32[208,128], index: 3, kind: output, shape index: {}]  }
   0x1   :  { %9 = vsyncpa [#allocation6], 0 }
   0x2   :  { %10 = vsyncpa [#allocation4], 0  ;;  %s892_s12 = smov [#allocation2]   ;;  %s820_s16 = scalar_lea.hbm %s992_s0, 3328 }
   0x3   :  { %s16_s13 = sshll.u32 %s892_s12, 4  ;;  %p821_p0 = scmp.ne.s32.totalorder %s992_s0, %s820_s16  ;;  %s17_s13 = int_to_ptr.vmem [resolvable:$true] %s16_s13 }
   0x4   :  { %p824_p1 = scmp.lt.u32.totalorder %s820_s16, %s992_s0 }
   0x6   :  { %p826_p2 = pnand %p824_p1, %p821_p0 }
   0x8   :  { %829 = shalt.err (!%p826_p2)
}
   0x9   :  { %s830_s21 = scalar_lea.vmem %s17_s13, 3328  ;;  %p835_p4 = scmp.lt.s32.totalorder %s17_s13, %s17_s13 }
   0xa   :  { %p831_p3 = scmp.ne.s32.totalorder %s17_s13, %s830_s21  ;;  %p836_p5 = scmp.lt.s32.totalorder %s830_s21, %s830_s21 }
   0xc   :  { %p837_p6 = por %p836_p5, %p835_p4 }
   0xe   :  { %p838_p7 = pnand %p837_p6, %p831_p3 }
  0x10   :  { %841 = shalt.err (!%p838_p7)
}
  0x11   :  { %s893_s22 = smov 128   ;;  %s894_s23 = smov 8  }
  0x12   :  { %22 = dma.hbm_to_vmem [thread:$0]  %s992_s0, 3328, %s17_s13, [#allocation3], %s893_s22, %s893_s22, %s894_s23  }
  0x13   :  { %s895_s26 = smov [#allocation5]   ;;  %s842_s30 = scalar_lea.hbm %s993_s1, 2048 }
  0x14   :  { %s28_s27 = sshll.u32 %s895_s26, 4  ;;  %p843_p8 = scmp.ne.s32.totalorder %s993_s1, %s842_s30  ;;  %s29_s27 = int_to_ptr.vmem [resolvable:$true] %s28_s27 }
  0x15   :  { %p846_p9 = scmp.lt.u32.totalorder %s842_s30, %s993_s1 }
  0x17   :  { %p848_p10 = pnand %p846_p9, %p843_p8 }
  0x19   :  { %851 = shalt.err (!%p848_p10)
}
  0x1a   :  { %s852_s8 = scalar_lea.vmem %s29_s27, 2048  ;;  %p857_p12 = scmp.lt.s32.totalorder %s29_s27, %s29_s27 }
  0x1b   :  { %p853_p11 = scmp.ne.s32.totalorder %s29_s27, %s852_s8  ;;  %p858_p13 = scmp.lt.s32.totalorder %s852_s8, %s852_s8 }
  0x1d   :  { %p859_p0 = por %p858_p13, %p857_p12 }
  0x1f   :  { %p860_p1 = pnand %p859_p0, %p853_p11 }
  0x21   :  { %863 = shalt.err (!%p860_p1)
}
  0x22   :  { %s896_s0 = smov 64   ;;  %s897_s9 = smov 4  }
  0x23   :  { %34 = dma.hbm_to_vmem [thread:$0]  %s993_s1, 2048, %s29_s27, [#allocation6], %s896_s0, %s896_s0, %s897_s9  }
  0x24   :  { %886 = dma.done.wait [#allocation3], 3328  }
  0x25   :  { %887 = vsyncadd [#allocation3], 4294963968 }
  0x26   :  { %888 = dma.done.wait [#allocation6], 2048  }
  0x27   :  { %889 = vsyncadd [#allocation6], 4294965248  ;;  %v765_v0 = vld [vmem:[#allocation5 + $0x40] sm:$0xff]   ;;  %v767_v2 = vld [vmem:[#allocation5 + $0x48] sm:$0xff]  }
  0x28   :  { %v766_v1 = vld [vmem:[#allocation5] sm:$0xff]   ;;  %648 = vmatprep.subr.bf16.mxu0 %v765_v0  ;;  %742 = vmatprep.subr.bf16.mxu1 %v765_v0  ;;  %v768_v3 = vld [vmem:[#allocation5 + $0x8] sm:$0xff]   ;;  %v769_v4 = vld [vmem:[#allocation5 + $0x50] sm:$0xff]  }
  0x29   :  { %649 = vmatpush3.bf16.msra.mxu0 %v766_v1  ;;  %750 = vmatpush3.bf16.msra.mxu1 %v766_v1  ;;  %v770_v5 = vld [vmem:[#allocation5 + $0x10] sm:$0xff]   ;;  %v771_v6 = vld [vmem:[#allocation5 + $0x58] sm:$0xff]   ;;  %v773_v8 = vld [vmem:[#allocation5 + $0x60] sm:$0xff]  }
  0x2a   :  { %650 = vmatprep.subr.bf16.mxu0 %v767_v2  ;;  %743 = vmatprep.subr.bf16.mxu1 %v767_v2  ;;  %v772_v7 = vld [vmem:[#allocation5 + $0x18] sm:$0xff]   ;;  %v774_v9 = vld [vmem:[#allocation5 + $0x20] sm:$0xff]   ;;  %v775_v10 = vld [vmem:[#allocation5 + $0x68] sm:$0xff]  }
  0x2b   :  { %v783_v11 = vld [vmem:[#allocation2 + $0x4] ss:$8 sps:$4 sm:$0xff]   ;;  %v786_v12 = vld [vmem:[#allocation2 + $0x74] ss:$8 sps:$4 sm:$0xff]   ;;  %v781_v18 = vld [vmem:[#allocation2] ss:$8 sps:$4 sm:$0xff]  }
  0x2c   :  { %v776_v13 = vld [vmem:[#allocation5 + $0x28] sm:$0xff]   ;;  %v777_v14 = vld [vmem:[#allocation5 + $0x70] sm:$0xff]   ;;  %428 = vmatprep.mubr.bf16.mxu0 %v783_v11  ;;  %484 = vmatprep.mubr.bf16.mxu1 %v786_v12  ;;  %v779_v16 = vld [vmem:[#allocation5 + $0x78] sm:$0xff]  }
  0x2d   :  { %651 = vmatpush3.bf16.msra.mxu0 %v768_v3  ;;  %751 = vmatpush3.bf16.msra.mxu1 %v768_v3  ;;  %v778_v15 = vld [vmem:[#allocation5 + $0x30] sm:$0xff]   ;;  %v780_v17 = vld [vmem:[#allocation5 + $0x38] sm:$0xff]   ;;  %v784_v19 = vld [vmem:[#allocation2 + $0x70] ss:$8 sps:$4 sm:$0xff]  }
  0x2e   :  { %652 = vmatprep.subr.bf16.mxu0 %v769_v4  ;;  %744 = vmatprep.subr.bf16.mxu1 %v769_v4  ;;  %v787_v20 = vld [vmem:[#allocation2 + $0x14] ss:$8 sps:$4 sm:$0xff]   ;;  %v790_v21 = vld [vmem:[#allocation2 + $0x84] ss:$8 sps:$4 sm:$0xff]   ;;  %v789_v22 = vld [vmem:[#allocation2 + $0x10] ss:$8 sps:$4 sm:$0xff]  }
  0x2f   :  { %v792_v23 = vld [vmem:[#allocation2 + $0x80] ss:$8 sps:$4 sm:$0xff]   ;;  %v793_v24 = vld [vmem:[#allocation2 + $0x24] ss:$8 sps:$4 sm:$0xff]   ;;  %v796_v25 = vld [vmem:[#allocation2 + $0x94] ss:$8 sps:$4 sm:$0xff]  }
  0x30   :  { %v795_v26 = vld [vmem:[#allocation2 + $0x20] ss:$8 sps:$4 sm:$0xff]   ;;  %v798_v27 = vld [vmem:[#allocation2 + $0x90] ss:$8 sps:$4 sm:$0xff]   ;;  %v799_v28 = vld [vmem:[#allocation2 + $0x34] ss:$8 sps:$4 sm:$0xff]  }
  0x31   :  { %653 = vmatpush3.bf16.msra.mxu0 %v770_v5  ;;  %752 = vmatpush3.bf16.msra.mxu1 %v770_v5  ;;  %v802_v29 = vld [vmem:[#allocation2 + $0xa4] ss:$8 sps:$4 sm:$0xff]   ;;  %v801_v30 = vld [vmem:[#allocation2 + $0x30] ss:$8 sps:$4 sm:$0xff]   ;;  %v804_v31 = vld [vmem:[#allocation2 + $0xa0] ss:$8 sps:$4 sm:$0xff]  }
  0x32   :  { %654 = vmatprep.subr.bf16.mxu0 %v771_v6  ;;  %745 = vmatprep.subr.bf16.mxu1 %v771_v6  ;;  %v805_v32 = vld [vmem:[#allocation2 + $0x44] ss:$8 sps:$4 sm:$0xff]   ;;  %v808_v33 = vld [vmem:[#allocation2 + $0xb4] ss:$8 sps:$4 sm:$0xff]   ;;  %v807_v34 = vld [vmem:[#allocation2 + $0x40] ss:$8 sps:$4 sm:$0xff]  }
  0x33   :  { %v810_v35 = vld [vmem:[#allocation2 + $0xb0] ss:$8 sps:$4 sm:$0xff]   ;;  %v811_v36 = vld [vmem:[#allocation2 + $0x54] ss:$8 sps:$4 sm:$0xff]   ;;  %v814_v37 = vld [vmem:[#allocation2 + $0xc4] ss:$8 sps:$4 sm:$0xff]  }
  0x34   :  { %v813_v38 = vld [vmem:[#allocation2 + $0x50] ss:$8 sps:$4 sm:$0xff]   ;;  %v816_v39 = vld [vmem:[#allocation2 + $0xc0] ss:$8 sps:$4 sm:$0xff]   ;;  %v817_v40 = vld [vmem:[#allocation2 + $0x64] ss:$8 sps:$4 sm:$0xff]  }
  0x35   :  { %655 = vmatpush3.bf16.msra.mxu0 %v772_v7  ;;  %753 = vmatpush3.bf16.msra.mxu1 %v772_v7  ;;  %v819_v41 = vld [vmem:[#allocation2 + $0x60] ss:$8 sps:$4 sm:$0xff]  }
  0x36   :  { %656 = vmatprep.subr.bf16.mxu0 %v773_v8  ;;  %746 = vmatprep.subr.bf16.mxu1 %v773_v8  ;;  %v949_v44 = vld [vmem:[%s994_s2] ss:$0 sm:$0xff]  ;;  %s898_s2 = smov [#allocation7]  }
  0x37   :  { %s590_s13 = sshll.u32 %s898_s2, 4  ;;  %s591_s13 = int_to_ptr.vmem [resolvable:$true] %s590_s13 }
  0x38   :  { %s864_s14 = scalar_lea.vmem %s591_s13, 3328  ;;  %p869_p3 = scmp.lt.s32.totalorder %s591_s13, %s591_s13 }
  0x39   :  { %657 = vmatpush3.bf16.msra.mxu0 %v774_v9  ;;  %754 = vmatpush3.bf16.msra.mxu1 %v774_v9  ;;  %p865_p2 = scmp.ne.s32.totalorder %s591_s13, %s864_s14  ;;  %p870_p4 = scmp.lt.s32.totalorder %s864_s14, %s864_s14 }
  0x3a   :  { %658 = vmatprep.subr.bf16.mxu0 %v775_v10  ;;  %747 = vmatprep.subr.bf16.mxu1 %v775_v10 }
  0x3b   :  { %p871_p5 = por %p870_p4, %p869_p3 }
  0x3d   :  { %659 = vmatpush3.bf16.msra.mxu0 %v776_v13  ;;  %755 = vmatpush3.bf16.msra.mxu1 %v776_v13  ;;  %p872_p6 = pnand %p871_p5, %p865_p2 }
  0x3e   :  { %660 = vmatprep.subr.bf16.mxu0 %v777_v14  ;;  %748 = vmatprep.subr.bf16.mxu1 %v777_v14 }
  0x41   :  { %661 = vmatpush3.bf16.msra.mxu0 %v778_v15  ;;  %756 = vmatpush3.bf16.msra.mxu1 %v778_v15 }
  0x42   :  { %662 = vmatprep.subr.bf16.mxu0 %v779_v16  ;;  %749 = vmatprep.subr.bf16.mxu1 %v779_v16 }
  0x45   :  { %663 = vmatpush3.bf16.msra.mxu0 %v780_v17  ;;  %757 = vmatpush3.bf16.msra.mxu1 %v780_v17 }
  0x48   :  { %429 = vmatmul.mubr.bf16.vlgmr.msra.gmra.mrb[0].mxu0 %v781_v18  ;;  %485 = vmatmul.mubr.bf16.vlgmr.msra.gmra.mrb[0].mxu1 %v784_v19 }
  0x49   :  { %436 = vmatprep.mubr.bf16.mxu0 %v787_v20  ;;  %492 = vmatprep.mubr.bf16.mxu1 %v790_v21 }
  0x50   :  { %437 = vmatmul.mubr.bf16.gmra.mrb[4].mxu0 %v789_v22  ;;  %493 = vmatmul.mubr.bf16.gmra.mrb[4].mxu1 %v792_v23 }
  0x51   :  { %444 = vmatprep.mubr.bf16.mxu0 %v793_v24  ;;  %500 = vmatprep.mubr.bf16.mxu1 %v796_v25 }
  0x58   :  { %445 = vmatmul.mubr.bf16.gmra.mrb[8].mxu0 %v795_v26  ;;  %501 = vmatmul.mubr.bf16.gmra.mrb[8].mxu1 %v798_v27 }
  0x59   :  { %452 = vmatprep.mubr.bf16.mxu0 %v799_v28  ;;  %508 = vmatprep.mubr.bf16.mxu1 %v802_v29 }
  0x60   :  { %453 = vmatmul.mubr.bf16.gmra.mrb[12].mxu0 %v801_v30  ;;  %509 = vmatmul.mubr.bf16.gmra.mrb[12].mxu1 %v804_v31 }
  0x61   :  { %460 = vmatprep.mubr.bf16.mxu0 %v805_v32  ;;  %516 = vmatprep.mubr.bf16.mxu1 %v808_v33 }
  0x68   :  { %461 = vmatmul.mubr.bf16.gmra.mrb[16].mxu0 %v807_v34  ;;  %517 = vmatmul.mubr.bf16.gmra.mrb[16].mxu1 %v810_v35 }
  0x69   :  { %468 = vmatprep.mubr.bf16.mxu0 %v811_v36  ;;  %524 = vmatprep.mubr.bf16.mxu1 %v814_v37 }
  0x70   :  { %469 = vmatmul.mubr.bf16.gmra.mrb[20].mxu0 %v813_v38  ;;  %525 = vmatmul.mubr.bf16.gmra.mrb[20].mxu1 %v816_v39 }
  0x71   :  { %476 = vmatprep.mubr.bf16.mxu0 %v817_v40 }
  0x78   :  { %477 = vmatmul.mubr.bf16.gmra.mrb[24].mxu0 %v819_v41 }
 0x11b   :  { %v664_v42 = vpop.f32.mrb[0].mxu0  ;;  %v706_v43 = vpop.f32.mrb[0].mxu1 }
 0x11c   :  { %v665_v45 = vpop.f32.mrb[1].mxu0  ;;  %v707_v46 = vpop.f32.mrb[1].mxu1 }
 0x11d   :  { %v666_v47 = vadd.f32 %v665_v45, %v664_v42  ;;  %v667_v48 = vpop.f32.mrb[2].mxu0  ;;  %v708_v49 = vadd.f32 %v707_v46, %v706_v43  ;;  %v709_v50 = vpop.f32.mrb[2].mxu1 }
 0x11e   :  { %v668_v51 = vpop.f32.mrb[3].mxu0  ;;  %v710_v52 = vpop.f32.mrb[3].mxu1 }
 0x11f   :  { %v533_v53 = vadd.f32 %v666_v47, %v949_v44  ;;  %v669_v54 = vadd.f32 %v668_v51, %v667_v48  ;;  %v547_v55 = vadd.f32 %v708_v49, %v949_v44  ;;  %v711_v56 = vadd.f32 %v710_v52, %v709_v50 }
 0x121   :  { %559 = vst [vmem:[#allocation7] sm:$0xff] %v533_v53  ;;  %v534_v57 = vadd.f32 %v669_v54, %v949_v44  ;;  %573 = vst [vmem:[#allocation7 + $0x70] sm:$0xff] %v547_v55  ;;  %v548_v58 = vadd.f32 %v711_v56, %v949_v44 }
 0x123   :  { %560 = vst [vmem:[#allocation7 + $0x8] sm:$0xff] %v534_v57  ;;  %v670_v59 = vpop.f32.mrb[4].mxu0  ;;  %574 = vst [vmem:[#allocation7 + $0x78] sm:$0xff] %v548_v58  ;;  %v712_v60 = vpop.f32.mrb[4].mxu1 }
 0x124   :  { %v671_v61 = vpop.f32.mrb[5].mxu0  ;;  %v713_v62 = vpop.f32.mrb[5].mxu1 }
 0x125   :  { %v672_v63 = vadd.f32 %v671_v61, %v670_v59  ;;  %v673_v0 = vpop.f32.mrb[6].mxu0  ;;  %v714_v1 = vadd.f32 %v713_v62, %v712_v60  ;;  %v715_v2 = vpop.f32.mrb[6].mxu1 }
 0x126   :  { %v674_v3 = vpop.f32.mrb[7].mxu0  ;;  %v716_v4 = vpop.f32.mrb[7].mxu1 }
 0x127   :  { %v535_v5 = vadd.f32 %v672_v63, %v949_v44  ;;  %v675_v6 = vadd.f32 %v674_v3, %v673_v0  ;;  %v549_v7 = vadd.f32 %v714_v1, %v949_v44  ;;  %v717_v8 = vadd.f32 %v716_v4, %v715_v2 }
 0x129   :  { %561 = vst [vmem:[#allocation7 + $0x10] sm:$0xff] %v535_v5  ;;  %v536_v9 = vadd.f32 %v675_v6, %v949_v44  ;;  %575 = vst [vmem:[#allocation7 + $0x80] sm:$0xff] %v549_v7  ;;  %v550_v10 = vadd.f32 %v717_v8, %v949_v44 }
 0x12b   :  { %562 = vst [vmem:[#allocation7 + $0x18] sm:$0xff] %v536_v9  ;;  %v676_v11 = vpop.f32.mrb[8].mxu0  ;;  %576 = vst [vmem:[#allocation7 + $0x88] sm:$0xff] %v550_v10  ;;  %v718_v12 = vpop.f32.mrb[8].mxu1 }
 0x12c   :  { %v677_v13 = vpop.f32.mrb[9].mxu0  ;;  %v719_v14 = vpop.f32.mrb[9].mxu1 }
 0x12d   :  { %v678_v15 = vadd.f32 %v677_v13, %v676_v11  ;;  %v679_v16 = vpop.f32.mrb[10].mxu0  ;;  %v720_v17 = vadd.f32 %v719_v14, %v718_v12  ;;  %v721_v18 = vpop.f32.mrb[10].mxu1 }
 0x12e   :  { %v680_v19 = vpop.f32.mrb[11].mxu0  ;;  %v722_v20 = vpop.f32.mrb[11].mxu1 }
 0x12f   :  { %v537_v21 = vadd.f32 %v678_v15, %v949_v44  ;;  %v681_v22 = vadd.f32 %v680_v19, %v679_v16  ;;  %v551_v23 = vadd.f32 %v720_v17, %v949_v44  ;;  %v723_v24 = vadd.f32 %v722_v20, %v721_v18 }
 0x131   :  { %563 = vst [vmem:[#allocation7 + $0x20] sm:$0xff] %v537_v21  ;;  %v538_v25 = vadd.f32 %v681_v22, %v949_v44  ;;  %577 = vst [vmem:[#allocation7 + $0x90] sm:$0xff] %v551_v23  ;;  %v552_v26 = vadd.f32 %v723_v24, %v949_v44 }
 0x133   :  { %564 = vst [vmem:[#allocation7 + $0x28] sm:$0xff] %v538_v25  ;;  %v682_v27 = vpop.f32.mrb[12].mxu0  ;;  %578 = vst [vmem:[#allocation7 + $0x98] sm:$0xff] %v552_v26  ;;  %v724_v28 = vpop.f32.mrb[12].mxu1 }
 0x134   :  { %v683_v29 = vpop.f32.mrb[13].mxu0  ;;  %v725_v30 = vpop.f32.mrb[13].mxu1 }
 0x135   :  { %v684_v31 = vadd.f32 %v683_v29, %v682_v27  ;;  %v685_v32 = vpop.f32.mrb[14].mxu0  ;;  %v726_v33 = vadd.f32 %v725_v30, %v724_v28  ;;  %v727_v34 = vpop.f32.mrb[14].mxu1 }
 0x136   :  { %v686_v35 = vpop.f32.mrb[15].mxu0  ;;  %v728_v36 = vpop.f32.mrb[15].mxu1 }
 0x137   :  { %v539_v37 = vadd.f32 %v684_v31, %v949_v44  ;;  %v687_v38 = vadd.f32 %v686_v35, %v685_v32  ;;  %v553_v39 = vadd.f32 %v726_v33, %v949_v44  ;;  %v729_v40 = vadd.f32 %v728_v36, %v727_v34 }
 0x139   :  { %565 = vst [vmem:[#allocation7 + $0x30] sm:$0xff] %v539_v37  ;;  %v540_v41 = vadd.f32 %v687_v38, %v949_v44  ;;  %579 = vst [vmem:[#allocation7 + $0xa0] sm:$0xff] %v553_v39  ;;  %v554_v42 = vadd.f32 %v729_v40, %v949_v44 }
 0x13b   :  { %566 = vst [vmem:[#allocation7 + $0x38] sm:$0xff] %v540_v41  ;;  %v688_v43 = vpop.f32.mrb[16].mxu0  ;;  %580 = vst [vmem:[#allocation7 + $0xa8] sm:$0xff] %v554_v42  ;;  %v730_v45 = vpop.f32.mrb[16].mxu1 }
 0x13c   :  { %v689_v46 = vpop.f32.mrb[17].mxu0  ;;  %v731_v47 = vpop.f32.mrb[17].mxu1 }
 0x13d   :  { %v690_v48 = vadd.f32 %v689_v46, %v688_v43  ;;  %v691_v49 = vpop.f32.mrb[18].mxu0  ;;  %v732_v50 = vadd.f32 %v731_v47, %v730_v45  ;;  %v733_v51 = vpop.f32.mrb[18].mxu1 }
 0x13e   :  { %v692_v52 = vpop.f32.mrb[19].mxu0  ;;  %v734_v53 = vpop.f32.mrb[19].mxu1 }
 0x13f   :  { %v541_v54 = vadd.f32 %v690_v48, %v949_v44  ;;  %v693_v55 = vadd.f32 %v692_v52, %v691_v49  ;;  %v555_v56 = vadd.f32 %v732_v50, %v949_v44  ;;  %v735_v57 = vadd.f32 %v734_v53, %v733_v51 }
 0x141   :  { %567 = vst [vmem:[#allocation7 + $0x40] sm:$0xff] %v541_v54  ;;  %v542_v58 = vadd.f32 %v693_v55, %v949_v44  ;;  %581 = vst [vmem:[#allocation7 + $0xb0] sm:$0xff] %v555_v56  ;;  %v556_v59 = vadd.f32 %v735_v57, %v949_v44 }
 0x143   :  { %568 = vst [vmem:[#allocation7 + $0x48] sm:$0xff] %v542_v58  ;;  %v694_v60 = vpop.f32.mrb[20].mxu0  ;;  %582 = vst [vmem:[#allocation7 + $0xb8] sm:$0xff] %v556_v59  ;;  %v736_v61 = vpop.f32.mrb[20].mxu1 }
 0x144   :  { %v695_v62 = vpop.f32.mrb[21].mxu0  ;;  %v737_v63 = vpop.f32.mrb[21].mxu1 }
 0x145   :  { %v696_v0 = vadd.f32 %v695_v62, %v694_v60  ;;  %v697_v1 = vpop.f32.mrb[22].mxu0  ;;  %v738_v2 = vadd.f32 %v737_v63, %v736_v61  ;;  %v739_v3 = vpop.f32.mrb[22].mxu1 }
 0x146   :  { %v698_v4 = vpop.f32.mrb[23].mxu0  ;;  %v740_v5 = vpop.f32.mrb[23].mxu1 }
 0x147   :  { %v543_v6 = vadd.f32 %v696_v0, %v949_v44  ;;  %v699_v7 = vadd.f32 %v698_v4, %v697_v1  ;;  %v557_v8 = vadd.f32 %v738_v2, %v949_v44  ;;  %v741_v9 = vadd.f32 %v740_v5, %v739_v3 }
 0x149   :  { %569 = vst [vmem:[#allocation7 + $0x50] sm:$0xff] %v543_v6  ;;  %v544_v10 = vadd.f32 %v699_v7, %v949_v44  ;;  %583 = vst [vmem:[#allocation7 + $0xc0] sm:$0xff] %v557_v8  ;;  %v558_v11 = vadd.f32 %v741_v9, %v949_v44 }
 0x14b   :  { %570 = vst [vmem:[#allocation7 + $0x58] sm:$0xff] %v544_v10  ;;  %v700_v12 = vpop.f32.mrb[24].mxu0  ;;  %584 = vst [vmem:[#allocation7 + $0xc8] sm:$0xff] %v558_v11 }
 0x14c   :  { %v701_v13 = vpop.f32.mrb[25].mxu0 }
 0x14d   :  { %v702_v14 = vadd.f32 %v701_v13, %v700_v12  ;;  %v703_v15 = vpop.f32.mrb[26].mxu0 }
 0x14e   :  { %v704_v16 = vpop.f32.mrb[27].mxu0 }
 0x14f   :  { %v545_v17 = vadd.f32 %v702_v14, %v949_v44  ;;  %v705_v18 = vadd.f32 %v704_v16, %v703_v15 }
 0x151   :  { %571 = vst [vmem:[#allocation7 + $0x60] sm:$0xff] %v545_v17  ;;  %v546_v19 = vadd.f32 %v705_v18, %v949_v44 }
 0x153   :  { %572 = vst [vmem:[#allocation7 + $0x68] sm:$0xff] %v546_v19 }
 0x154   :  { %875 = shalt.err (!%p872_p6)
}
 0x155   :  { %s876_s17 = scalar_lea.hbm %s995_s3, 3328 }
 0x156   :  { %p877_p7 = scmp.ne.s32.totalorder %s995_s3, %s876_s17  ;;  %p880_p8 = scmp.lt.u32.totalorder %s876_s17, %s995_s3 }
 0x158   :  { %p882_p9 = pnand %p880_p8, %p877_p7 }
 0x15a   :  { %885 = shalt.err (!%p882_p9)
}
 0x15b   :  { %596 = dma.vmem_to_hbm [thread:$0]  %s591_s13, 3328, %s995_s3, [#allocation4], %s893_s22, %s893_s22, %s894_s23  }
 0x15c   :  { %890 = dma.done.wait [#allocation4], 3328  }
 0x15d   :  { %891 = vsyncadd [#allocation4], 4294963968 }
 0x15e   :  { %600 = vsyncpa [#allocation3], 1 }
 0x15f   :  { %601 = vsyncpa [#allocation6], 1 }
 0x160   :  { %602 = vsyncpa [#allocation4], 1 }

</bundles_post_ra>
